<compile_context>
chip_gen: v7x
topology: tpu7x:2x2x1
jax: 0.10.0
libtpu: 0.0.40
codegen_flags: <defaults>
</compile_context>

<pallas_src>
import jax
import jax.numpy as jnp
import numpy as np
from jax.experimental import pallas as pl
from jax.experimental.pallas import tpu as pltpu

LN_EPS = 1e-5


def sgu_cls_kernel(idx_ref, x_ref, gamma_ref, beta_ref, wconv_ref, bconv_ref,
                   out_ref, xn_ref):
    n = pl.program_id(0)        # batch element
    st = pl.program_id(1)       # output-row tile within this batch element
    tS = out_ref.shape[1]
    S = x_ref.shape[1]

    # ---- LayerNorm over d_ffn, once per batch element, straight into the bf16 scratch.
    # Single sweep over x (fused mean / mean-of-squares); f32 math on the VPU.
    @pl.when(st == 0)
    def _():
        x = x_ref[0].astype(jnp.float32)                        # (S, D)
        mean = jnp.mean(x, axis=-1, keepdims=True)              # (S, 1)
        mean_sq = jnp.mean(x * x, axis=-1, keepdims=True)
        var = jnp.maximum(mean_sq - mean * mean, 0.0)           # biased variance
        xn = (x - mean) * jax.lax.rsqrt(var + LN_EPS)
        xn = xn * gamma_ref[...] + beta_ref[...]                # gamma/beta: (1, D) f32
        xn_ref[...] = xn.astype(xn_ref.dtype)

    # ---- Selected spatial projection.  Both (S,S) weights are resident in VMEM
    # (constant index_map); only a dynamic first-axis ref index moves per batch.
    idx = idx_ref[n]
    if tS == S:                                  # no s-tiling: take the whole weight
        w_rows = wconv_ref[idx]                                 # (S, S)  matmul dtype
        b_rows = bconv_ref[idx]                                 # (S, 1)  f32
        x_rows = x_ref[0].astype(jnp.float32)                   # (S, D)  residual
    else:
        row0 = pl.multiple_of(st * tS, 8)
        w_rows = wconv_ref[idx, pl.ds(row0, tS), :]             # (tS, S)
        b_rows = bconv_ref[idx, pl.ds(row0, tS), :]             # (tS, 1)
        x_rows = x_ref[0, pl.ds(row0, tS), :].astype(jnp.float32)

    y = jnp.dot(w_rows, xn_ref[...], preferred_element_type=jnp.float32)   # (tS, D) f32

    # ---- bias + residual; single cast at the HBM boundary (bf16 out when x is bf16) ----
    out_ref[0] = (y + b_rows + x_rows).astype(out_ref.dtype)


def spatial_gating_unit_cls(x, gamma, beta, w_cls, b_cls, w_conv, b_conv,
                            *, matmul_dtype=jnp.bfloat16, s_tile=None):
    """x: (B, S, D) in f32 or bf16. Returns (B, S, D) in x.dtype."""
    B, S, D = x.shape
    out_dtype = x.dtype
    act_item = jnp.dtype(out_dtype).itemsize
    w_item = jnp.dtype(matmul_dtype).itemsize

    gamma_f32 = gamma.reshape(1, D).astype(jnp.float32)
    beta_f32 = beta.reshape(1, D).astype(jnp.float32)
    # Both projections live in VMEM as MXU-dtype operands; conv bias stays f32.
    wconv = w_conv.reshape(2, S, S).astype(matmul_dtype)        # [proj_i, proj_ii]
    bconv = b_conv.reshape(2, S, 1).astype(jnp.float32)
    # TODO(synk): bconv kept (2, S, 1) (lane dim 1 -> padded loads); lane-dense (2, 1, S)
    # would need an in-kernel lane->sublane relayout, a wash at these sizes.
    # TODO(synk): for production shapes, supply D % 128 == 0 and S % 8 == 0 (ideally S a
    # multiple of the MXU tile) — padding activations here would add the very HBM traffic
    # this kernel is bound by, so alignment is left to the caller.

    # ---- CLS gate from row 0 only, in plain JAX (O(B*D)).  tanh omitted: it is
    # sign-preserving and only the sign selects the branch (gate < 0 -> proj_i).
    cls = x[:, 0, :].astype(jnp.float32)                        # (B, D)
    cmean = jnp.mean(cls, axis=-1, keepdims=True)
    cvar = jnp.mean((cls - cmean) ** 2, axis=-1, keepdims=True)
    cls_n = (cls - cmean) * jax.lax.rsqrt(cvar + LN_EPS)
    cls_n = cls_n * gamma_f32 + beta_f32
    gate = cls_n @ w_cls.reshape(D, 1).astype(jnp.float32) \
        + b_cls.reshape(1, 1).astype(jnp.float32)               # (B, 1)
    gate_idx = (gate[:, 0] >= 0.0).astype(jnp.int32)            # 0 -> proj_i, 1 -> proj_ii

    # ---- Output-row tiling only when the per-batch slab is large (v7x: 64 MiB VMEM).
    # x stays resident across s-tiles; xn is computed once per batch element.
    if s_tile is None:
        s_tile = S
        slab_bytes = S * D * (act_item + 4 + w_item)    # x tile + f32 LN temp + xn scratch
        if slab_bytes > (8 << 20) and S % 8 == 0:
            for cand in (1024, 512, 256, 128):
                if S % cand == 0 and cand < S:
                    s_tile = cand
                    break
    assert S % s_tile == 0
    n_s = S // s_tile

    grid_spec = pltpu.PrefetchScalarGridSpec(
        num_scalar_prefetch=1,               # gate_idx lands in SMEM
        grid=(B, n_s),
        in_specs=[
            pl.BlockSpec((1, S, D), lambda n, s, g: (n, 0, 0)),      # x (resident over s)
            pl.BlockSpec((1, D), lambda n, s, g: (0, 0)),            # gamma
            pl.BlockSpec((1, D), lambda n, s, g: (0, 0)),            # beta
            pl.BlockSpec((2, S, S), lambda n, s, g: (0, 0, 0)),      # BOTH conv weights
            pl.BlockSpec((2, S, 1), lambda n, s, g: (0, 0, 0)),      # BOTH conv biases
        ],
        out_specs=pl.BlockSpec((1, s_tile, D), lambda n, s, g: (n, s, 0)),
        scratch_shapes=[pltpu.VMEM((S, D), matmul_dtype)],           # xn (persists over s)
    )
    # TODO(synk): on v5e/v6e, pipeline_mode=pl.Buffered(3) on the x/out specs hides DMA
    # jitter at the cost of one extra S*D buffer; skipped to keep v7x VMEM headroom.

    cost = pl.CostEstimate(
        flops=2 * B * S * S * D + 10 * B * S * D,
        transcendentals=B * S,
        bytes_accessed=(2 * B * S * D * act_item           # x read + out write
                        + 2 * S * S * w_item               # both weights, read once
                        + 2 * S * 4 + 2 * D * 4 + B * 4),  # biases, gamma/beta, gate_idx
    )

    # ---- VMEM budget: derived from the actual part, always leaving headroom. ----
    try:
        vmem_capacity = int(pltpu.get_tpu_info().vmem_capacity_bytes)
    except Exception:                                    # pragma: no cover
        vmem_capacity = 64 * 1024 * 1024                 # conservative fallback
    vmem_cap = (vmem_capacity * 3) // 4                  # ~48 MiB on v7x, ~96 MiB on v5e/v6e

    vmem_need = (2 * S * D * act_item                    # x, double-buffered
                 + 2 * s_tile * D * act_item             # out, double-buffered
                 + 2 * 2 * S * S * w_item                # both weights (x2 buffers)
                 + 2 * 2 * S * 128 * 4                   # biases, lane-padded
                 + 4 * 8 * max(D, 128) * 4               # gamma/beta, padded
                 + S * D * w_item                        # xn scratch
                 + 4 * S * D * 4)                        # f32 LN temporaries headroom
    vmem_limit = int(min(vmem_cap, max(2 * vmem_need, 16 * 1024 * 1024)))

    return pl.pallas_call(
        sgu_cls_kernel,
        out_shape=jax.ShapeDtypeStruct((B, S, D), out_dtype),
        grid_spec=grid_spec,
        cost_estimate=cost,
        compiler_params=pltpu.CompilerParams(
            dimension_semantics=("parallel", "arbitrary"),   # batch across TCs; s serial
            vmem_limit_bytes=vmem_limit),
    )(gate_idx, x, gamma_f32, beta_f32, wconv, bconv)


def reference_jax(x, gamma, beta, w_cls, b_cls, w_conv, b_conv):
    """Plain-JAX f32 reference mirroring the PyTorch forward."""
    B, S, D = x.shape
    x = x.astype(jnp.float32)
    mean = jnp.mean(x, axis=-1, keepdims=True)
    var = jnp.mean((x - mean) ** 2, axis=-1, keepdims=True)
    xn = (x - mean) / jnp.sqrt(var + LN_EPS) * gamma + beta
    cls = jnp.tanh(xn[:, 0] @ w_cls + b_cls)                       # (B, 1)
    idx = (cls[:, 0] >= 0.0).astype(jnp.int32)                     # 0 if < 0 else 1
    w_sel = w_conv.reshape(2, S, S)[idx]                           # (B, S, S)
    b_sel = b_conv.reshape(2, S, 1)[idx]                           # (B, S, 1)
    y = jnp.einsum("bij,bjd->bid", w_sel, xn) + b_sel
    return y + x


if __name__ == "__main__":
    B, S, D = 2, 8, 128   # batch, seq_len, d_ffn (small test shapes; D lane-dense)
    key = jax.random.PRNGKey(0)
    kx, kwc, kbc, kw1, kw2 = jax.random.split(key, 5)

    x = jax.random.normal(kx, (B, S, D), dtype=jnp.float32)

    # Parameters (deterministic synthetic init; shapes match the PyTorch module)
    gamma = jnp.ones((D,), jnp.float32)                            # LayerNorm weight
    beta = jnp.zeros((D,), jnp.float32)                            # LayerNorm bias
    w_cls = jax.random.normal(kwc, (D, 1), jnp.float32) * 0.1      # Linear(d_ffn, 1)
    b_cls = jax.random.normal(kbc, (1,), jnp.float32) * 0.1
    w_proj_i = jax.random.normal(kw1, (S, S), jnp.float32) * 0.1   # Conv1d(S, S, 1)
    w_proj_ii = jax.random.normal(kw2, (S, S), jnp.float32) * 0.1
    w_conv = jnp.stack([w_proj_i, w_proj_ii], axis=0)              # (2, S, S)
    b_conv = jnp.ones((2, S), jnp.float32)                         # nn.init.constant_(bias, 1)

    # ---- f32 activations (bf16 MXU operands, f32 accumulation) ----
    out_f32 = jax.block_until_ready(
        spatial_gating_unit_cls(x, gamma, beta, w_cls, b_cls, w_conv, b_conv))
    ref = reference_jax(x, gamma, beta, w_cls, b_cls, w_conv, b_conv)
    np.testing.assert_allclose(np.asarray(out_f32), np.asarray(ref), rtol=2e-2, atol=2e-2)

    # ---- bf16 activations at the HBM boundary (the main bandwidth lever) ----
    x_bf16 = x.astype(jnp.bfloat16)
    out_bf16 = jax.block_until_ready(
        spatial_gating_unit_cls(x_bf16, gamma, beta, w_cls, b_cls, w_conv, b_conv))
    assert out_bf16.dtype == jnp.bfloat16
    ref_bf16 = reference_jax(x_bf16.astype(jnp.float32), gamma, beta, w_cls, b_cls,
                             w_conv, b_conv)
    np.testing.assert_allclose(np.asarray(out_bf16.astype(jnp.float32)),
                               np.asarray(ref_bf16), rtol=5e-2, atol=5e-2)

    print("KERNEL_OK")
</pallas_src>

<mosaic_0001>
module attributes {stable_mosaic.version = 11 : i64} {
  func.func @sgu_cls_kernel(%arg0: i32, %arg1: i32, %arg2: memref<2xi32, #tpu.memory_space<smem>>, %arg3: memref<1x8x128xf32, #tpu.memory_space<vmem>>, %arg4: memref<1x128xf32, #tpu.memory_space<vmem>>, %arg5: memref<1x128xf32, #tpu.memory_space<vmem>>, %arg6: memref<2x8x8xbf16, #tpu.memory_space<vmem>>, %arg7: memref<2x8x1xf32, #tpu.memory_space<vmem>>, %arg8: memref<1x8x128xf32, #tpu.memory_space<vmem>>, %arg9: memref<8x128xbf16, #tpu.memory_space<vmem>>) attributes {dimension_semantics = [#tpu.dimension_semantics<parallel>, #tpu.dimension_semantics<arbitrary>], iteration_bounds = array<i64: 2, 1>, scalar_prefetch = 1 : i64, scratch_operands = 1 : i64, tpu.core_type = #tpu.core_type<tc>, window_params = [{transform_indices = @transform_0, window_bounds = array<i64: 1, 8, 128>}, {pipeline_mode = #tpu.pipeline_mode<synchronous>, transform_indices = @transform_1, window_bounds = array<i64: 1, 128>}, {pipeline_mode = #tpu.pipeline_mode<synchronous>, transform_indices = @transform_2, window_bounds = array<i64: 1, 128>}, {pipeline_mode = #tpu.pipeline_mode<synchronous>, transform_indices = @transform_3, window_bounds = array<i64: 2, 8, 8>}, {pipeline_mode = #tpu.pipeline_mode<synchronous>, transform_indices = @transform_4, window_bounds = array<i64: 2, 8, 1>}, {transform_indices = @transform_5, window_bounds = array<i64: 1, 8, 128>}]} {
    %c0_i32 = arith.constant 0 : i32
    %0 = arith.cmpi eq, %arg1, %c0_i32 : i32
    %1 = arith.extui %0 : i1 to i32
    %c0_i32_0 = arith.constant 0 : i32
    %2 = arith.cmpi ne, %1, %c0_i32_0 : i32
    scf.if %2 {
      %c0_12 = arith.constant 0 : index
      %c0_13 = arith.constant 0 : index
      %c0_14 = arith.constant 0 : index
      %21 = vector.load %arg3[%c0_12, %c0_13, %c0_14] : memref<1x8x128xf32, #tpu.memory_space<vmem>>, vector<1x8x128xf32>
      %22 = vector.shape_cast %21 : vector<1x8x128xf32> to vector<8x128xf32>
      %cst_15 = arith.constant dense<0.000000e+00> : vector<8xf32>
      %23 = vector.multi_reduction <add>, %22, %cst_15 [1] : vector<8x128xf32> to vector<8xf32>
      %24 = vector.shape_cast %23 : vector<8xf32> to vector<8x1xf32>
      %cst_16 = arith.constant 1.280000e+02 : f32
      %25 = vector.broadcast %cst_16 : f32 to vector<8x1xf32>
      %26 = arith.divf %24, %25 : vector<8x1xf32>
      %27 = arith.mulf %22, %22 : vector<8x128xf32>
      %cst_17 = arith.constant dense<0.000000e+00> : vector<8xf32>
      %28 = vector.multi_reduction <add>, %27, %cst_17 [1] : vector<8x128xf32> to vector<8xf32>
      %29 = vector.shape_cast %28 : vector<8xf32> to vector<8x1xf32>
      %cst_18 = arith.constant 1.280000e+02 : f32
      %30 = vector.broadcast %cst_18 : f32 to vector<8x1xf32>
      %31 = arith.divf %29, %30 : vector<8x1xf32>
      %32 = arith.mulf %26, %26 : vector<8x1xf32>
      %33 = arith.subf %31, %32 : vector<8x1xf32>
      %cst_19 = arith.constant 0.000000e+00 : f32
      %34 = vector.broadcast %cst_19 : f32 to vector<8x1xf32>
      %35 = arith.maximumf %33, %34 : vector<8x1xf32>
      %36 = vector.broadcast %26 : vector<8x1xf32> to vector<8x128xf32>
      %37 = arith.subf %22, %36 : vector<8x128xf32>
      %cst_20 = arith.constant 9.99999974E-6 : f32
      %38 = vector.broadcast %cst_20 : f32 to vector<8x1xf32>
      %39 = arith.addf %35, %38 : vector<8x1xf32>
      %40 = math.rsqrt %39 : vector<8x1xf32>
      %41 = vector.broadcast %40 : vector<8x1xf32> to vector<8x128xf32>
      %42 = arith.mulf %37, %41 : vector<8x128xf32>
      %c0_21 = arith.constant 0 : index
      %c0_22 = arith.constant 0 : index
      %43 = vector.load %arg4[%c0_21, %c0_22] : memref<1x128xf32, #tpu.memory_space<vmem>>, vector<1x128xf32>
      %44 = vector.broadcast %43 : vector<1x128xf32> to vector<8x128xf32>
      %45 = arith.mulf %42, %44 : vector<8x128xf32>
      %c0_23 = arith.constant 0 : index
      %c0_24 = arith.constant 0 : index
      %46 = vector.load %arg5[%c0_23, %c0_24] : memref<1x128xf32, #tpu.memory_space<vmem>>, vector<1x128xf32>
      %47 = vector.broadcast %46 : vector<1x128xf32> to vector<8x128xf32>
      %48 = arith.addf %45, %47 : vector<8x128xf32>
      %49 = arith.truncf %48 : vector<8x128xf32> to vector<8x128xbf16>
      %c0_25 = arith.constant 0 : index
      %c0_26 = arith.constant 0 : index
      %50 = vector.load %arg9[%c0_25, %c0_26] : memref<8x128xbf16, #tpu.memory_space<vmem>>, vector<8x128xbf16>
      tpu.vector_store %arg9[%c0_25, %c0_26], %49 {strides = array<i32>} : memref<8x128xbf16, #tpu.memory_space<vmem>>, vector<8x128xbf16>,
    } else {
    }
    %3 = arith.index_cast %arg0 : i32 to index
    %4 = memref.load %arg2[%3] : memref<2xi32, #tpu.memory_space<smem>>
    %5 = arith.index_cast %4 : i32 to index
    %c0 = arith.constant 0 : index
    %c0_1 = arith.constant 0 : index
    %6 = vector.load %arg6[%5, %c0, %c0_1] : memref<2x8x8xbf16, #tpu.memory_space<vmem>>, vector<1x8x8xbf16>
    %7 = vector.shape_cast %6 : vector<1x8x8xbf16> to vector<8x8xbf16>
    %8 = arith.index_cast %4 : i32 to index
    %c0_2 = arith.constant 0 : index
    %c0_3 = arith.constant 0 : index
    %9 = vector.load %arg7[%8, %c0_2, %c0_3] : memref<2x8x1xf32, #tpu.memory_space<vmem>>, vector<1x8x1xf32>
    %10 = vector.shape_cast %9 : vector<1x8x1xf32> to vector<8x1xf32>
    %c0_4 = arith.constant 0 : index
    %c0_5 = arith.constant 0 : index
    %c0_6 = arith.constant 0 : index
    %11 = vector.load %arg3[%c0_4, %c0_5, %c0_6] : memref<1x8x128xf32, #tpu.memory_space<vmem>>, vector<1x8x128xf32>
    %12 = vector.shape_cast %11 : vector<1x8x128xf32> to vector<8x128xf32>
    %c0_7 = arith.constant 0 : index
    %c0_8 = arith.constant 0 : index
    %13 = vector.load %arg9[%c0_7, %c0_8] : memref<8x128xbf16, #tpu.memory_space<vmem>>, vector<8x128xbf16>
    %cst = arith.constant dense<0.000000e+00> : vector<8x128xf32>
    %14 = tpu.matmul %7, %13, %cst {dimension_numbers = #tpu.dot_dimension_numbers<[1], [0], [0], [1], [0, 0, 1, 1], [], []>} : vector<8x8xbf16>, vector<8x128xbf16>, vector<8x128xf32> -> vector<8x128xf32>
    %15 = vector.broadcast %10 : vector<8x1xf32> to vector<8x128xf32>
    %16 = arith.addf %14, %15 : vector<8x128xf32>
    %17 = arith.addf %16, %12 : vector<8x128xf32>
    %c0_9 = arith.constant 0 : index
    %c0_10 = arith.constant 0 : index
    %c0_11 = arith.constant 0 : index
    %18 = vector.load %arg8[%c0_9, %c0_10, %c0_11] : memref<1x8x128xf32, #tpu.memory_space<vmem>>, vector<1x8x128xf32>
    %19 = vector.shape_cast %18 : vector<1x8x128xf32> to vector<8x128xf32>
    %20 = vector.shape_cast %17 : vector<8x128xf32> to vector<1x8x128xf32>
    tpu.vector_store %arg8[%c0_9, %c0_10, %c0_11], %20 {strides = array<i32>} : memref<1x8x128xf32, #tpu.memory_space<vmem>>, vector<1x8x128xf32>,
    return
  }
  func.func @transform_0(%arg0: i32, %arg1: i32, %arg2: memref<2xi32, #tpu.memory_space<smem>>) -> (i32, i32, i32) {
    %c0_i32 = arith.constant 0 : i32
    %c0_i32_0 = arith.constant 0 : i32
    %c0_i32_1 = arith.constant 0 : i32
    return %arg0, %c0_i32, %c0_i32_0 : i32, i32, i32
  }
  func.func @transform_1(%arg0: i32, %arg1: i32, %arg2: memref<2xi32, #tpu.memory_space<smem>>) -> (i32, i32) {
    %c0_i32 = arith.constant 0 : i32
    %c0_i32_0 = arith.constant 0 : i32
    %c0_i32_1 = arith.constant 0 : i32
    return %c0_i32, %c0_i32_0 : i32, i32
  }
  func.func @transform_2(%arg0: i32, %arg1: i32, %arg2: memref<2xi32, #tpu.memory_space<smem>>) -> (i32, i32) {
    %c0_i32 = arith.constant 0 : i32
    %c0_i32_0 = arith.constant 0 : i32
    %c0_i32_1 = arith.constant 0 : i32
    return %c0_i32, %c0_i32_0 : i32, i32
  }
  func.func @transform_3(%arg0: i32, %arg1: i32, %arg2: memref<2xi32, #tpu.memory_space<smem>>) -> (i32, i32, i32) {
    %c0_i32 = arith.constant 0 : i32
    %c0_i32_0 = arith.constant 0 : i32
    %c0_i32_1 = arith.constant 0 : i32
    %c0_i32_2 = arith.constant 0 : i32
    return %c0_i32, %c0_i32_0, %c0_i32_1 : i32, i32, i32
  }
  func.func @transform_4(%arg0: i32, %arg1: i32, %arg2: memref<2xi32, #tpu.memory_space<smem>>) -> (i32, i32, i32) {
    %c0_i32 = arith.constant 0 : i32
    %c0_i32_0 = arith.constant 0 : i32
    %c0_i32_1 = arith.constant 0 : i32
    %c0_i32_2 = arith.constant 0 : i32
    return %c0_i32, %c0_i32_0, %c0_i32_1 : i32, i32, i32
  }
  func.func @transform_5(%arg0: i32, %arg1: i32, %arg2: memref<2xi32, #tpu.memory_space<smem>>) -> (i32, i32, i32) {
    %c0_i32 = arith.constant 0 : i32
    %c0_i32_0 = arith.constant 0 : i32
    return %arg0, %arg1, %c0_i32 : i32, i32, i32
  }
}

</mosaic_0001>

<bundles_post_ra>
// kernel: tpu_custom_call.1
= control target key start
LH: loop header
LB: loop body
LE: loop exit
PB: predicated region body
PF: predicated region fallthrough
CT: control target
= control target key end

     0   :  { %s890_s0 = inlined_call_operand.vmem [shape: s32[2], index: 0, kind: input, shape index: {}]   ;;  %s891_s1 = inlined_call_operand.vmem [shape: f32[2,8,128], index: 1, kind: input, shape index: {}]   ;;  %s892_s2 = inlined_call_operand.hbm [shape: f32[1,128], index: 2, kind: input, shape index: {}]   ;;  %s893_s3 = inlined_call_operand.vmem [shape: f32[1,128], index: 3, kind: input, shape index: {}]   ;;  %s894_s4 = inlined_call_operand.vmem [shape: bf16[2,8,8], index: 4, kind: input, shape index: {}]   ;;  %s895_s5 = inlined_call_operand.vmem [shape: f32[2,8,1], index: 5, kind: input, shape index: {}]   ;;  %s896_s6 = inlined_call_operand.hbm [shape: f32[2,8,128], index: 6, kind: output, shape index: {}]  }
   0x1   :  { %s11_s23 = sshll.u32 %s890_s0, 4  ;;  %s12_s23 = int_to_ptr.vmem [resolvable:$true] %s11_s23 }
   0x2   :  { %s556_s24 = scalar_lea.vmem %s12_s23, 16  ;;  %p561_p1 = scmp.lt.s32.totalorder %s12_s23, %s12_s23 }
   0x3   :  { %p557_p0 = scmp.ne.s32.totalorder %s12_s23, %s556_s24  ;;  %p562_p2 = scmp.lt.s32.totalorder %s556_s24, %s556_s24 }
   0x5   :  { %p563_p3 = por %p562_p2, %p561_p1 }
   0x7   :  { %p564_p4 = pnand %p563_p3, %p557_p0 }
   0x9   :  { %567 = shalt.err (!%p564_p4)  }
   0xa   :  { %s682_s25 = smov [#allocation4]  }
   0xb   :  { %14 = dma.vmem_to_smem %s12_s23, 16, %s682_s25, [#allocation3] }
   0xc   :  { %648 = dma.done.wait [#allocation3], 16 }
   0xd   :  { %649 = vsyncadd [#allocation3], 4294967280 }
   0xe   :  { %16 = sfence }
   0xf   :  { %17 = vsyncpa [#allocation6], 0 }
  0x10   :  { %18 = vsyncpa [#allocation7], 0 }
  0x11   :  { %20 = vsyncpa [#allocation7 + $0x1], 0  ;;  %s726_s26 = smov 0   ;;  %s728_s27 = smov 0  }
  0x12   :  { %s730_s0 = smov 0   ;;  %s732_s28 = smov 0  }
  0x13   :  { %s734_s29 = smov 0   ;;  %s736_s30 = smov 0  }
  0x14 LB: > { %s456_s7 = sadd.s32 4294967295, %s680_s30   ;;  %s457_s8 = sadd.s32 4294967294, %s680_s30   ;;  %s680_s30 = sphi %s736_s30, %s26_s30   ;;  %s676_s29 = sphi %s734_s29, %s914_s29   ;;  %s672_s28 = sphi %s732_s28, %s913_s28   ;;  %s668_s0 = sphi %s730_s0, %s912_s0   ;;  %s664_s27 = sphi %s728_s27, %s911_s27   ;;  %s660_s26 = sphi %s726_s26, %s910_s26  }
  0x15   : > { %s38_s9 = sadd.s32 1, %s676_s29  ;;  %s157_s10 = sadd.s32 1, %s668_s0 }
  0x16   : > { %p40_p5 = scmp.ge.s32.totalorder %s38_s9, 2  ;;  %p167_p6 = scmp.ne.s32.totalorder %s668_s0, %s664_s27 }
  0x17   : > { %p168_p7 = scmp.eq.s32.totalorder %s456_s7, 1  ;;  %p173_p8 = scmp.ne.s32.totalorder %s664_s27, %s660_s26 }
  0x18   : > { %s916_s9 = smov (%p40_p5, %s38_s9), 0  ;;  %p174_p10 = scmp.eq.s32.totalorder %s457_s8, 1 }
  0x19   : > { %p766_p9 = por %p168_p7, %p167_p6  ;;  %s152_s12 = ssub.s32 %s676_s29, %s916_s9 }
  0x1a   : > { %p458_p11 = scmp.ge.s32.totalorder %s680_s30, 1  ;;  %p155_p12 = scmp.eq.s32.totalorder %s152_s12, 0 }
  0x1b   : > { %s901_s11 = scalar_select %p766_p9, 1, 0 }
  0x1c   : > { %p773_p13 = por %p174_p10, %p173_p8  ;;  %p181_p0 = scmp.lt.s32.totalorder %s680_s30, 3 }
  0x1d   : > { %s779_s14 = scalar_select %p155_p12, %s668_s0, %s157_s10  }
  0x1e   : > { %s902_s13 = scalar_select %p773_p13, 1, 0 }
  0x1f   : > { %p781_p1 = pnand %p458_p11, %p181_p0  ;;  %p785_p2 = scmp.eq.s32.totalorder %s456_s7, 0 }
  0x20   : > { %s683_s17 = smov [#allocation5]   ;;  %s568_s22 = scalar_lea.hbm %s892_s2, 16 }
  0x21   : > { %s903_s15 = scalar_select %p781_p1, 1, 0 }
  0x22   : > { %s904_s16 = scalar_select %p785_p2, 1, 0 }
  0x23   : > { %p488_p3 = pneg %p781_p1  ;;  %s194_s18 = sshll.u32 %s683_s17, 4  ;;  %s195_s18 = int_to_ptr.vmem [resolvable:$true] %s194_s18 }
  0x24   : > { %p569_p5 = scmp.ne.s32.totalorder %s892_s2, %s568_s22  ;;  %p575_p10 = scmp.lt.u32.totalorder %s568_s22, %s892_s2 }
  0x25   : > { %p793_p4 = pnand %p785_p2, %p488_p3 }
  0x27   : > { %p570_p6 = pneg %p793_p4 }
  0x29   : > { %p571_p7 = pnand %p570_p6, %p569_p5 }
  0x2b   : > { %p572_p8 = pneg %p571_p7 }
  0x2d   : > { %p577_p11 = pnand %p575_p10, %p572_p8 }
  0x2f   : > { %580 = shalt.err (!%p577_p11)
}
  0x30   : > { %s581_s8 = scalar_lea.vmem %s195_s18, 16  ;;  %s588_s10 = scalar_lea.vmem %s195_s18, 32 }
  0x31   : > { %p582_p12 = scmp.ne.s32.totalorder %s195_s18, %s581_s8  ;;  %p589_p13 = scmp.lt.s32.totalorder %s195_s18, %s195_s18 }
  0x32   : > { %p590_p9 = scmp.lt.s32.totalorder %s588_s10, %s581_s8 }
  0x33   : > { %p584_p0 = pnand %p582_p12, %p570_p6 }
  0x34   : > { %p591_p2 = por %p590_p9, %p589_p13 }
  0x35   : > { %p585_p3 = pneg %p584_p0 }
  0x37   : > { %p592_p1 = pnand %p591_p2, %p585_p3 }
  0x39   : > { %595 = shalt.err (!%p592_p1)
}
  0x3a   : > { %491 = dma.hbm_to_vmem [thread:$0]  (!%p793_p4), %s892_s2, 16, %s195_s18, [#allocation6]  }
  0x3b   : > { %p906_p5 = scmp.ne.s32.totalorder %s903_s15, 0 }
  0x3c   : > { %p907_p7 = scmp.ne.s32.totalorder (!%p906_p5), %s904_s16, 0 }
  0x3d   : > { %223 = sbr.rel (%p906_p5) target bundleno = 491 (0x1eb), region = 40 }
  0x44   : > { %651 = dma.done.wait (%p907_p7), [#allocation6], 16  }
  0x45   : > { %653 = vsyncadd (%p907_p7), [#allocation6], 4294967280  ;;  %p250_p9 = scmp.lt.s32.totalorder %s672_s28, 1  ;;  %v684_v2 = vmov 0.0   ;;  %s825_s15 = sld [smem:[#allocation4 + %s672_s28]]  ;;  %vm685_vm0 = vmmov 0  }
  0x46   : > { %476 = vmatprep.subr.bf16.mxu0 %v684_v2  ;;  %478 = vmatprep.mubr.msk.bf16.mxu0 %vm685_vm0, %v684_v2  ;;  %v686_v3 = vmov 0   ;;  %v465_v15 = vld [vmem:[#allocation5] ss:$0 sm:$0xff]  ;;  %v466_v17 = vld [vmem:[%s893_s3] ss:$0 sm:$0xff]  ;;  %vm311_vm1 = vcmask 1043456  }
  0x47   : > { %s251_s20 = scalar_select %p250_p9, %s672_s28, 1  ;;  %552 = vset.pattern.permute.xlu1 %v686_v3  ;;  %553 = vset.pattern.permute.xlu0 %v686_v3  ;;  %vm307_vm2 = vcmask 64512  }
  0x48   : > { %s471_s22 = sshll.u32 %s672_s28, 7  ;;  %p908_p1 = scmp.ne.s32.totalorder %s901_s11, 0 }
  0x49   : > { %s464_s21 = sshll.u32 %s251_s20, 3  ;;  %s843_s24 = scalar_lea.hbm %s896_s6, %s471_s22 }
  0x4a   : > { %s253_s23 = scalar_lea.vmem %s891_s1, %s464_s21  ;;  %s247_s21 = sand.u32 1, %s664_s27  }
  0x4b   : > { %v259_v0 = vld [vmem:[%s253_s23] sm:$0xff]  ;;  %s468_s16 = sshll.u32 %s825_s15, 3  ;;  %s467_s10 = sshll.u32 %s825_s15, 2 }
  0x4c   : > { %260 = vadd.xlane.f32.xlu0 %v259_v0  ;;  %v264_v1 = vmul.f32 %v259_v0, %v259_v0  ;;  %s298_s25 = scalar_lea.vmem %s895_s5, %s468_s16  ;;  %s295_s20 = scalar_lea.vmem %s894_s4, %s467_s10 }
  0x4d   : > { %v299_v4 = vld [vmem:[%s298_s25] sm:$0xff]  ;;  %s463_s19 = sshll.u32 %s247_s21, 3  ;;  %s358_s25 = scalar_lea.sflag [#allocation7], %s247_s21 }
  0x4e   : > { %304 = vperm.xlu1 %552, %v299_v4   ;;  %v296_v23 = vld [vmem:[%s295_s20] sm:$0xf]  ;;  %s249_s23 = scalar_lea.vmem [#allocation8], %s463_s19  ;;  %s687_s7 = smov [#allocation8]  }
  0x4f   : > { %s372_s16 = sshll.u32 %s249_s23, 4  ;;  %s600_s8 = sshll.u32 %s687_s7, 4  ;;  %s845_s16 = int_to_ptr.vmem [resolvable:$true] %s372_s16  ;;  %s601_s8 = int_to_ptr.vmem [resolvable:$false] %s600_s8 }
  0x50   : > { %265 = vadd.xlane.f32.xlu0 %v264_v1  ;;  %s596_s28 = scalar_lea.vmem %s845_s16, 128  ;;  %s602_s10 = scalar_lea.vmem %s601_s8, 256 }
  0x51   : > { %p597_p13 = scmp.ne.s32.totalorder %s845_s16, %s596_s28  ;;  %p603_p6 = scmp.lt.s32.totalorder %s845_s16, %s601_s8 }
  0x52   : > { %p604_p8 = scmp.lt.s32.totalorder %s602_s10, %s596_s28 }
  0x53   : > { %p598_p2 = pnand %p597_p13, %p908_p1 }
  0x54   : > { %p605_p10 = por %p604_p8, %p603_p6 }
  0x55   : > { %p599_p4 = pneg %p598_p2 }
  0x57   : > { %p606_p11 = pnand %p605_p10, %p599_p4 }
  0xcd   : > { %v305_v24 = vpop.permute.xlu1 %304 }
  0xd9   : > { %v261_v5 = vpop.xlane.xlu0 %260 }
  0xda   : > { %v263_v6 = vmul.f32 0.0078125, %v261_v5 }
  0xdc   : > { %v268_v8 = vmul.f32 %v263_v6, %v263_v6  ;;  %v271_v13 = vsub.f32 %v259_v0, %v263_v6 }
  0xdd   : > { %v266_v7 = vpop.xlane.xlu0 %265 }
  0xde   : > { %v267_v9 = vmul.f32 0.0078125, %v266_v7 }
  0xe0   : > { %v269_v10 = vsub.f32 %v267_v9, %v268_v8 }
  0xe2   : > { %v270_v11 = vmax.f32 %v269_v10, 0.0 }
  0xe4   : > { %v272_v12 = vadd.f32 1e-05, %v270_v11 }
  0xe6   : > { %554 = vrsqrt.f32 %v272_v12 }
  0xf0   : > { %v555_v14 = vpop.eup %554 }
  0xf1   : > { %v274_v16 = vmul.f32 %v555_v14, %v271_v13 }
  0xf3   : > { %v282_v18 = vmul.f32 %v465_v15, %v274_v16 }
  0xf5   : > { %v290_v19 = vadd.f32 %v466_v17, %v282_v18 }
  0xf7   : > { %v291_v20 = vpack.c.bf16 %v290_v19, %v290_v19 }
  0xf9   : > { %292 = vst [vmem:[#allocation2] sm:$0xf] %v291_v20 }
 0x100   : > { %v301_v21 = vld [vmem:[#allocation2] sm:$0xf] }
 0x101   : > { %v313_v22 = vsel %vm311_vm1, %v301_v21, 0 }
 0x102   : > { %477 = vmatpush3.bf16.msra.mxu0 %v313_v22 }
 0x105   : > { %479 = vmatmul.mubr.msk.bf16.vlgmr.msra.gmra.mrb[0].mxu0 %vm307_vm2, %v296_v23 }
 0x1d8   : > { %v349_v25 = vpop.f32.mrb[0].mxu0 }
 0x1d9   : > { %v350_v26 = vadd.f32 %v349_v25, %v305_v24  ;;  %v480_v27 = vpop.f32.mrb[1].mxu0 }
 0x1da   : > { %v352_v28 = vpop.f32.mrb[2].mxu0 }
 0x1db   : > { %v355_v29 = vadd.f32 %v350_v26, %v259_v0  ;;  %v481_v30 = vpop.f32.mrb[3].mxu0 }
 0x1dd   : > { %356 = vst [vmem:[%s249_s23] sm:$0xff] %v355_v29 }
 0x1de   : > { %609 = shalt.err (!%p606_p11)
}
 0x1df   : > { %s610_s12 = scalar_lea.hbm %s843_s24, 128  ;;  %s614_s21 = scalar_lea.hbm %s896_s6, 256 }
 0x1e0   : > { %p611_p12 = scmp.ne.s32.totalorder %s843_s24, %s610_s12  ;;  %p615_p5 = scmp.lt.u32.totalorder %s843_s24, %s896_s6 }
 0x1e1   : > { %p616_p7 = scmp.lt.u32.totalorder %s614_s21, %s610_s12  ;;  %p618_p13 = scmp.lt.u32.totalorder %s610_s12, %s843_s24 }
 0x1e2   : > { %p612_p0 = pnand %p611_p12, %p908_p1 }
 0x1e3   : > { %p617_p9 = por %p616_p7, %p615_p5 }
 0x1e4   : > { %p613_p3 = pneg %p612_p0 }
 0x1e5   : > { %p619_p2 = por %p618_p13, %p617_p9 }
 0x1e7   : > { %p620_p4 = pnand %p619_p2, %p613_p3 }
 0x1e9   : > { %623 = shalt.err (!%p620_p4)
}
 0x1ea   : > { %486 = dma.vmem_to_hbm [thread:$0]  (%p908_p1), %s845_s16, 128, %s843_s24, %s358_s25  }
 0x1eb PF: > { %p498_p6 = scmp.ge.s32.totalorder %s680_s30, 2  ;;  %s384_s23 = sand.u32 1, %s660_s26  }
 0x1ec   : > { %p909_p8 = scmp.ne.s32.totalorder %s902_s13, 0  ;;  %s385_s15 = scalar_lea.sflag [#allocation7], %s384_s23 }
 0x1ee   : > { %p493_p10 = pnand %p498_p6, %p909_p8 }
 0x1f0   : > { %655 = dma.done.wait (!%p493_p10), %s385_s15, 128  }
 0x1f1   : > { %657 = vsyncadd (!%p493_p10), %s385_s15, 4294967168  ;;  %s26_s30 = sadd.s32 1, %s680_s30   ;;  %s910_s26 = smov %s664_s27 }
 0x1f2   : > { %p23_p11 = scmp.ge.s32.totalorder %s26_s30, 4   ;;  %s911_s27 = smov %s668_s0 }
 0x1f3   : > { %s912_s0 = smov %s779_s14  ;;  %s913_s28 = smov %s676_s29 }
 0x1f4   : > { %s914_s29 = smov %s916_s9  ;;  %25 = sbr.rel (!%p23_p11) target bundleno = 20 (0x14), region = 86 }
 0x1fb   :  { %390 = vsyncpa [#allocation6], 1 }
 0x1fc   :  { %392 = vsyncpa [#allocation6 + $0x1], 1 }
 0x1fd   :  { %393 = vsyncpa [#allocation7], 1 }
 0x1fe   :  { %395 = vsyncpa [#allocation7 + $0x1], 1 }

</bundles_post_ra>
